<compile_context>
chip_gen: v7x
topology: tpu7x:2x2x1
jax: 0.10.0
libtpu: 0.0.40
codegen_flags: <defaults>
</compile_context>

<pallas_src>
import math
from functools import partial

import jax
import jax.numpy as jnp
import numpy as np
from jax.experimental import pallas as pl
from jax.experimental.pallas import tpu as pltpu


def _power_spec_kernel(x_ref, basis_ref, o_ref, frames_ref, *,
                       t_blk, hop, ratio, f_pad, eps):
    """One (batch, time-block) step.

    x_ref      : (n_chunks, hop)      whole per-batch padded signal, chunked by hop
    basis_ref  : (n_fft, 2*f_pad)     [cos | -sin] DFT basis (resident)
    o_ref      : (t_blk, f_pad)       dB spectrogram block (time x freq, lane-dense)
    frames_ref : (t_blk, n_fft)       VMEM scratch: im2col slab of frames
    """
    tb = pl.program_id(1)
    base = pl.multiple_of(tb * t_blk, t_blk)   # first chunk row of this time block

    # im2col: frame t spans chunk rows [t, t + ratio).  Gather the `ratio`
    # overlapping hop-wide chunk slices into one lane-contiguous slab so the
    # DFT is a single large-K matmul (K = n_fft) instead of `ratio` tiny ones.
    for c in range(ratio):                     # static, unrolled (ratio = n_fft // hop)
        frames_ref[:, c * hop:(c + 1) * hop] = x_ref[pl.ds(base + c, t_blk), :]

    # One MXU matmul produces real and imaginary parts side by side.
    spec = jnp.dot(frames_ref[...], basis_ref[...],
                   preferred_element_type=jnp.float32)   # (t_blk, 2*f_pad)
    re = spec[:, :f_pad]                       # 128-aligned lane split
    im = spec[:, f_pad:]

    # mag = sqrt(re^2 + im^2 + eps); pow = mag^2 = re^2 + im^2 + eps
    power = re * re + im * im + eps
    o_ref[...] = (10.0 / math.log(10.0)) * jnp.log(power + eps)   # 10*log10(.)


def _build_basis(n_fft, n_freq, f_pad):
    """[cos | -sin] DFT basis, (n_fft, 2*f_pad), angles computed in float64."""
    n = np.arange(n_fft, dtype=np.float64)[:, None]
    f = np.arange(n_freq, dtype=np.float64)[None, :]
    ang = 2.0 * np.pi * n * f / n_fft
    basis = np.zeros((n_fft, 2 * f_pad), dtype=np.float64)
    basis[:, :n_freq] = np.cos(ang)                       # real part
    basis[:, f_pad:f_pad + n_freq] = -np.sin(ang)         # imaginary part
    return jnp.asarray(basis, dtype=jnp.float32)


def power_spectrogram(x, n_fft=2048, hop_length=512, win_length=2048,
                      eps=1e-20, t_blk=8):
    """x: (B, L) float32. Returns dB spectrogram (B, n_fft//2+1, n_frames)."""
    # TODO(synk): win_length < n_fft (centered, zero-padded window) not implemented;
    # the module defaults use win_length == n_fft (rectangular window of ones).
    assert win_length == n_fft, "only win_length == n_fft supported"
    assert n_fft % hop_length == 0, "framing decomposition requires n_fft % hop == 0"
    assert t_blk % 8 == 0

    B, L = x.shape
    pad = n_fft // 2
    # torch.stft(center=True, pad_mode='reflect'): reflect-pad by n_fft//2 each side.
    xp = jnp.pad(x.astype(jnp.float32), ((0, 0), (pad, pad)), mode="reflect")
    l_pad = L + 2 * pad

    n_frames = 1 + (l_pad - n_fft) // hop_length
    ratio = n_fft // hop_length
    n_freq = n_fft // 2 + 1
    f_pad = ((n_freq + 127) // 128) * 128                 # lane-dense freq width

    n_tb = pl.cdiv(n_frames, t_blk)
    t_out = n_tb * t_blk
    # Chunk the signal by hop; zero-pad so the last (partial) time block's
    # chunk reads stay in bounds, and round rows up to a sublane multiple.
    n_chunks = max(-(-l_pad // hop_length), t_out + ratio - 1)
    n_chunks = ((n_chunks + 7) // 8) * 8
    buf_len = n_chunks * hop_length
    xp = jnp.pad(xp, ((0, 0), (0, buf_len - l_pad)))
    x_chunks = xp.reshape(B, n_chunks, hop_length)

    basis = _build_basis(n_fft, n_freq, f_pad)

    kernel = partial(_power_spec_kernel, t_blk=t_blk, hop=hop_length,
                     ratio=ratio, f_pad=f_pad, eps=float(eps))

    # VMEM budget: double-buffered blocks + resident basis + frames scratch.
    vmem_bytes = 4 * (2 * n_chunks * hop_length
                      + 2 * n_fft * 2 * f_pad
                      + 2 * t_blk * f_pad
                      + t_blk * n_fft)
    vmem_limit = min(48 << 20, max(vmem_bytes + (4 << 20), 16 << 20))

    out = pl.pallas_call(
        kernel,
        out_shape=jax.ShapeDtypeStruct((B, t_out, f_pad), jnp.float32),
        grid=(B, n_tb),
        in_specs=[
            # Whole per-batch chunked signal: constant block along time axis
            # -> stays resident in VMEM across all time blocks of this batch.
            pl.BlockSpec((None, n_chunks, hop_length), lambda b, t: (b, 0, 0)),
            # DFT basis: constant block index -> fetched once, kept resident.
            pl.BlockSpec((n_fft, 2 * f_pad), lambda b, t: (0, 0)),
        ],
        out_specs=pl.BlockSpec((None, t_blk, f_pad), lambda b, t: (b, t, 0)),
        scratch_shapes=[pltpu.VMEM((t_blk, n_fft), jnp.float32)],
        compiler_params=pltpu.CompilerParams(
            dimension_semantics=("parallel", "parallel"),
            vmem_limit_bytes=vmem_limit),
    )(x_chunks, basis)

    # Drop freq/time padding; PyTorch returns (B, n_freq, n_frames).
    return jnp.transpose(out[:, :n_frames, :n_freq], (0, 2, 1))


def power_spectrogram_reference(x, n_fft=2048, hop_length=512, win_length=2048,
                                eps=1e-20):
    """Independent pure-JAX reference using jnp.fft.rfft."""
    assert win_length == n_fft
    pad = n_fft // 2
    xp = jnp.pad(x.astype(jnp.float32), ((0, 0), (pad, pad)), mode="reflect")
    n_frames = 1 + (xp.shape[1] - n_fft) // hop_length
    frames = jnp.stack(
        [xp[:, t * hop_length:t * hop_length + n_fft] for t in range(n_frames)],
        axis=1)                                            # (B, T, n_fft)
    spec = jnp.fft.rfft(frames, axis=-1)                   # (B, T, n_freq)
    power = jnp.real(spec) ** 2 + jnp.imag(spec) ** 2 + eps
    db = 10.0 * jnp.log10(power + eps)
    return jnp.transpose(db, (0, 2, 1))                    # (B, n_freq, T)


if __name__ == "__main__":
    # Small deterministic config consistent with the module (scaled-down STFT):
    # batch=2, signal length 1024, n_fft=256, hop=64, win_length=256.
    B, L = 2, 1024
    n_fft, hop, win = 256, 64, 256

    key = jax.random.PRNGKey(0)
    x = jax.random.normal(key, (B, L), jnp.float32)

    out = jax.block_until_ready(
        power_spectrogram(x, n_fft=n_fft, hop_length=hop, win_length=win))
    ref = jax.block_until_ready(
        power_spectrogram_reference(x, n_fft=n_fft, hop_length=hop, win_length=win))

    np.testing.assert_allclose(np.asarray(out), np.asarray(ref),
                               rtol=2e-3, atol=2e-2)
    print("KERNEL_OK")
</pallas_src>

<mosaic_0001>
module attributes {stable_mosaic.version = 11 : i64} {
  func.func @_power_spec_kernel(%arg0: i32, %arg1: i32, %arg2: memref<1x32x64xf32, #tpu.memory_space<vmem>>, %arg3: memref<256x512xf32, #tpu.memory_space<vmem>>, %arg4: memref<1x8x256xf32, #tpu.memory_space<vmem>>, %arg5: memref<8x256xf32, #tpu.memory_space<vmem>>) attributes {dimension_semantics = [#tpu.dimension_semantics<parallel>, #tpu.dimension_semantics<parallel>], iteration_bounds = array<i64: 2, 3>, scalar_prefetch = 0 : i64, scratch_operands = 1 : i64, tpu.core_type = #tpu.core_type<tc>, window_params = [{transform_indices = @transform_0, window_bounds = array<i64: 1, 32, 64>}, {pipeline_mode = #tpu.pipeline_mode<synchronous>, transform_indices = @transform_1, window_bounds = array<i64: 256, 512>}, {transform_indices = @transform_2, window_bounds = array<i64: 1, 8, 256>}]} {
    %c8_i32 = arith.constant 8 : i32
    %0 = arith.muli %arg1, %c8_i32 : i32
    %1 = tpu.assume_multiple %0, 8 : i32
    %c0_i32 = arith.constant 0 : i32
    %2 = arith.addi %1, %c0_i32 : i32
    %c0 = arith.constant 0 : index
    %3 = arith.index_cast %2 : i32 to index
    %c0_0 = arith.constant 0 : index
    %4 = vector.load %arg2[%c0, %3, %c0_0] : memref<1x32x64xf32, #tpu.memory_space<vmem>>, vector<1x8x64xf32>
    %5 = vector.shape_cast %4 : vector<1x8x64xf32> to vector<8x64xf32>
    %c0_1 = arith.constant 0 : index
    %c0_2 = arith.constant 0 : index
    %6 = vector.load %arg5[%c0_1, %c0_2] : memref<8x256xf32, #tpu.memory_space<vmem>>, vector<8x64xf32>
    tpu.vector_store %arg5[%c0_1, %c0_2], %5 {strides = array<i32>} : memref<8x256xf32, #tpu.memory_space<vmem>>, vector<8x64xf32>,
    %c1_i32 = arith.constant 1 : i32
    %7 = arith.addi %1, %c1_i32 : i32
    %c0_3 = arith.constant 0 : index
    %8 = arith.index_cast %7 : i32 to index
    %c0_4 = arith.constant 0 : index
    %9 = vector.load %arg2[%c0_3, %8, %c0_4] : memref<1x32x64xf32, #tpu.memory_space<vmem>>, vector<1x8x64xf32>
    %10 = vector.shape_cast %9 : vector<1x8x64xf32> to vector<8x64xf32>
    %c0_5 = arith.constant 0 : index
    %c64 = arith.constant 64 : index
    %11 = vector.load %arg5[%c0_5, %c64] : memref<8x256xf32, #tpu.memory_space<vmem>>, vector<8x64xf32>
    tpu.vector_store %arg5[%c0_5, %c64], %10 {strides = array<i32>} : memref<8x256xf32, #tpu.memory_space<vmem>>, vector<8x64xf32>,
    %c2_i32 = arith.constant 2 : i32
    %12 = arith.addi %1, %c2_i32 : i32
    %c0_6 = arith.constant 0 : index
    %13 = arith.index_cast %12 : i32 to index
    %c0_7 = arith.constant 0 : index
    %14 = vector.load %arg2[%c0_6, %13, %c0_7] : memref<1x32x64xf32, #tpu.memory_space<vmem>>, vector<1x8x64xf32>
    %15 = vector.shape_cast %14 : vector<1x8x64xf32> to vector<8x64xf32>
    %c0_8 = arith.constant 0 : index
    %c128 = arith.constant 128 : index
    %16 = vector.load %arg5[%c0_8, %c128] : memref<8x256xf32, #tpu.memory_space<vmem>>, vector<8x64xf32>
    tpu.vector_store %arg5[%c0_8, %c128], %15 {strides = array<i32>} : memref<8x256xf32, #tpu.memory_space<vmem>>, vector<8x64xf32>,
    %c3_i32 = arith.constant 3 : i32
    %17 = arith.addi %1, %c3_i32 : i32
    %c0_9 = arith.constant 0 : index
    %18 = arith.index_cast %17 : i32 to index
    %c0_10 = arith.constant 0 : index
    %19 = vector.load %arg2[%c0_9, %18, %c0_10] : memref<1x32x64xf32, #tpu.memory_space<vmem>>, vector<1x8x64xf32>
    %20 = vector.shape_cast %19 : vector<1x8x64xf32> to vector<8x64xf32>
    %c0_11 = arith.constant 0 : index
    %c192 = arith.constant 192 : index
    %21 = vector.load %arg5[%c0_11, %c192] : memref<8x256xf32, #tpu.memory_space<vmem>>, vector<8x64xf32>
    tpu.vector_store %arg5[%c0_11, %c192], %20 {strides = array<i32>} : memref<8x256xf32, #tpu.memory_space<vmem>>, vector<8x64xf32>,
    %c0_12 = arith.constant 0 : index
    %c0_13 = arith.constant 0 : index
    %22 = vector.load %arg5[%c0_12, %c0_13] : memref<8x256xf32, #tpu.memory_space<vmem>>, vector<8x256xf32>
    %c0_14 = arith.constant 0 : index
    %c0_15 = arith.constant 0 : index
    %23 = vector.load %arg3[%c0_14, %c0_15] : memref<256x512xf32, #tpu.memory_space<vmem>>, vector<256x512xf32>
    %cst = arith.constant dense<0.000000e+00> : vector<8x512xf32>
    %24 = tpu.matmul %22, %23, %cst {dimension_numbers = #tpu.dot_dimension_numbers<[1], [0], [0], [1], [0, 0, 1, 1], [], []>} : vector<8x256xf32>, vector<256x512xf32>, vector<8x512xf32> -> vector<8x512xf32>
    %25 = vector.extract_strided_slice %24 {offsets = [0, 0], sizes = [8, 256], strides = [1, 1]} : vector<8x512xf32> to vector<8x256xf32>
    %26 = vector.extract_strided_slice %24 {offsets = [0, 256], sizes = [8, 256], strides = [1, 1]} : vector<8x512xf32> to vector<8x256xf32>
    %27 = arith.mulf %25, %25 : vector<8x256xf32>
    %28 = arith.mulf %26, %26 : vector<8x256xf32>
    %29 = arith.addf %27, %28 : vector<8x256xf32>
    %cst_16 = arith.constant 9.99999968E-21 : f32
    %30 = vector.broadcast %cst_16 : f32 to vector<8x256xf32>
    %31 = arith.addf %29, %30 : vector<8x256xf32>
    %cst_17 = arith.constant 9.99999968E-21 : f32
    %32 = vector.broadcast %cst_17 : f32 to vector<8x256xf32>
    %33 = arith.addf %31, %32 : vector<8x256xf32>
    %34 = math.log %33 : vector<8x256xf32>
    %cst_18 = arith.constant 4.34294462 : f32
    %35 = vector.broadcast %cst_18 : f32 to vector<8x256xf32>
    %36 = arith.mulf %35, %34 : vector<8x256xf32>
    %c0_19 = arith.constant 0 : index
    %c0_20 = arith.constant 0 : index
    %c0_21 = arith.constant 0 : index
    %37 = vector.load %arg4[%c0_19, %c0_20, %c0_21] : memref<1x8x256xf32, #tpu.memory_space<vmem>>, vector<1x8x256xf32>
    %38 = vector.shape_cast %37 : vector<1x8x256xf32> to vector<8x256xf32>
    %39 = vector.shape_cast %36 : vector<8x256xf32> to vector<1x8x256xf32>
    tpu.vector_store %arg4[%c0_19, %c0_20, %c0_21], %39 {strides = array<i32>} : memref<1x8x256xf32, #tpu.memory_space<vmem>>, vector<1x8x256xf32>,
    return
  }
  func.func @transform_0(%arg0: i32, %arg1: i32) -> (i32, i32, i32) {
    %c0_i32 = arith.constant 0 : i32
    %c0_i32_0 = arith.constant 0 : i32
    %c0_i32_1 = arith.constant 0 : i32
    return %arg0, %c0_i32, %c0_i32_0 : i32, i32, i32
  }
  func.func @transform_1(%arg0: i32, %arg1: i32) -> (i32, i32) {
    %c0_i32 = arith.constant 0 : i32
    %c0_i32_0 = arith.constant 0 : i32
    %c0_i32_1 = arith.constant 0 : i32
    return %c0_i32, %c0_i32_0 : i32, i32
  }
  func.func @transform_2(%arg0: i32, %arg1: i32) -> (i32, i32, i32) {
    %c0_i32 = arith.constant 0 : i32
    %c0_i32_0 = arith.constant 0 : i32
    return %arg0, %arg1, %c0_i32 : i32, i32, i32
  }
}

</mosaic_0001>

<bundles_post_ra>
// kernel: tpu_custom_call.1
= control target key start
LH: loop header
LB: loop body
LE: loop exit
PB: predicated region body
PF: predicated region fallthrough
CT: control target
= control target key end

     0   :  { %s1376_s0 = inlined_call_operand.hbm [shape: f32[2,32,64], index: 0, kind: input, shape index: {}]   ;;  %s1377_s1 = inlined_call_operand.hbm [shape: f32[256,512], index: 1, kind: input, shape index: {}]   ;;  %s1378_s2 = inlined_call_operand.hbm [shape: f32[2,24,256], index: 2, kind: output, shape index: {}]  }
   0x1   :  { %1388 = sst [smem:[#allocation16_spill]] %s1377_s1 }
   0x2   :  { %7 = vsyncpa [#allocation4], 0 }
   0x3   :  { %9 = vsyncpa [#allocation4 + $0x1], 0 }
   0x4   :  { %10 = vsyncpa [#allocation7], 0 }
   0x5   :  { %11 = vsyncpa [#allocation5], 0 }
   0x6   :  { %13 = vsyncpa [#allocation5 + $0x1], 0  ;;  %s1114_s9 = smov 0   ;;  %s1116_s10 = smov 0  }
   0x7   :  { %s1118_s11 = smov 0   ;;  %s1120_s12 = smov 0  }
   0x8   :  { %s1122_s13 = smov 0   ;;  %s1124_s14 = smov 0  }
   0x9   :  { %s1126_s15 = smov 0   ;;  %s1128_s16 = smov 0  }
   0xa   :  { %s1130_s17 = smov 0   ;;  %s1132_s18 = smov 0  }
   0xb   :  { %s1134_s19 = smov 0  }
   0xc LB: > { %1389 = sst [smem:[#allocation12_spill]] %s1081_s17  ;;  %s629_s20 = sadd.s32 4294967295, %s1089_s19   ;;  %s1089_s19 = sphi %s1134_s19, %s19_s19   ;;  %s1085_s18 = sphi %s1132_s18, %s1418_s18   ;;  %s1081_s17 = sphi %s1130_s17, %s1409_s17   ;;  %s1077_s16 = sphi %s1128_s16, %s1417_s16   ;;  %s1073_s15 = sphi %s1126_s15, %s1408_s15   ;;  %s1069_s14 = sphi %s1124_s14, %s1416_s14   ;;  %s1065_s13 = sphi %s1122_s13, %s1415_s13   ;;  %s1061_s12 = sphi %s1120_s12, %s1414_s12   ;;  %s1057_s11 = sphi %s1118_s11, %s1413_s11   ;;  %s1053_s10 = sphi %s1116_s10, %s1412_s10   ;;  %s1049_s9 = sphi %s1114_s9, %s1411_s9  }
   0xd   : > { %s630_s21 = sadd.s32 4294967294, %s1089_s19   ;;  %p51_p0 = scmp.ne.s32.totalorder %s1065_s13, %s1061_s12 }
   0xe   : > { %p1170_p1 = scmp.eq.s32.totalorder %s629_s20, 0  ;;  %s87_s23 = sadd.s32 1, %s1057_s11 }
   0xf   : > { %p97_p2 = scmp.ne.s32.totalorder %s1057_s11, %s1053_s10  ;;  %p98_p4 = scmp.eq.s32.totalorder %s629_s20, 5 }
  0x10   : > { %s1390_s22 = scalar_select %p1170_p1, 1, 0 }
  0x11   : > { %p1179_p3 = por %p1170_p1, %p51_p0  ;;  %p103_p5 = scmp.ne.s32.totalorder %s1053_s10, %s1049_s9 }
  0x12   : > { %p104_p6 = scmp.eq.s32.totalorder %s630_s21, 5  ;;  %p1185_p7 = por %p98_p4, %p97_p2 }
  0x13   : > { %s1391_s24 = scalar_select %p1179_p3, 1, 0 }
  0x14   : > { %s1392_s25 = scalar_select %p1185_p7, 1, 0 }
  0x15   : > { %p631_p8 = scmp.ge.s32.totalorder %s1089_s19, 1  ;;  %p1190_p9 = por %p104_p6, %p103_p5 }
  0x16   : > { %p111_p10 = scmp.lt.s32.totalorder %s1089_s19, 7  ;;  %s1091_s28 = smov [#allocation6]  }
  0x17   : > { %s1393_s26 = scalar_select %p1190_p9, 1, 0 }
  0x18   : > { %p1195_p11 = pnand %p631_p8, %p111_p10  ;;  %s123_s29 = sshll.u32 %s1091_s28, 4  ;;  %s124_s29 = int_to_ptr.vmem [resolvable:$true] %s123_s29 }
  0x19   : > { %1394 = sst [smem:[#allocation13_spill]] %s1393_s26  ;;  %s1397_s1 = sld [smem:[#allocation16_spill]] }
  0x1a   : > { %s1395_s27 = scalar_select %p1195_p11, 1, 0 }
  0x1b   : > { %p791_p12 = pneg %p1195_p11 }
  0x1d   : > { %p1203_p13 = pnand %p791_p12, %p1170_p1 }
  0x1f   : > { %s905_s5 = scalar_lea.hbm %s1397_s1, 16384  ;;  %p907_p2 = pneg %p1203_p13 }
  0x20   : > { %p906_p0 = scmp.ne.s32.totalorder %s1397_s1, %s905_s5  ;;  %p912_p6 = scmp.lt.u32.totalorder %s905_s5, %s1397_s1 }
  0x22   : > { %p908_p4 = pnand %p907_p2, %p906_p0 }
  0x24   : > { %p909_p5 = pneg %p908_p4 }
  0x26   : > { %p914_p8 = pnand %p912_p6, %p909_p5 }
  0x28   : > { %917 = shalt.err (!%p914_p8)
}
  0x29   : > { %s918_s20 = scalar_lea.vmem %s124_s29, 16384  ;;  %p926_p7 = scmp.lt.s32.totalorder %s124_s29, %s124_s29 }
  0x2a   : > { %p919_p10 = scmp.ne.s32.totalorder %s124_s29, %s918_s20  ;;  %p927_p1 = scmp.lt.s32.totalorder %s918_s20, %s918_s20 }
  0x2c   : > { %p921_p12 = pnand %p919_p10, %p907_p2  ;;  %p928_p3 = por %p927_p1, %p926_p7 }
  0x2e   : > { %p922_p9 = pneg %p921_p12 }
  0x30   : > { %p929_p11 = pnand %p928_p3, %p922_p9 }
  0x32   : > { %932 = shalt.err (!%p929_p11)
}
  0x33   : > { %s1092_s21 = smov 512   ;;  %s1093_s28 = smov 32  }
  0x34   : > { %794 = dma.hbm_to_vmem [thread:$0]  (!%p1203_p13), %s1397_s1, 16384, %s124_s29, [#allocation7], %s1092_s21, %s1092_s21, %s1093_s28  }
  0x35   : > { %s28_s5 = sadd.s32 1, %s1081_s17  ;;  %s31_s6 = sadd.s32 1, %s1085_s18 }
  0x36   : > { %p29_p1 = scmp.ge.s32.totalorder %s28_s5, 3  ;;  %s38_s7 = sadd.s32 1, %s1069_s14 }
  0x37   : > { %p45_p3 = scmp.ne.s32.totalorder %s1069_s14, %s1065_s13  ;;  %p46_p7 = scmp.eq.s32.totalorder %s1089_s19, 0 }
  0x38   : > { %s1420_s5 = smov (%p29_p1, %s28_s5), 0  ;;  %s1422_s6 = smov (!%p29_p1, %s31_s6), %s1085_s18 }
  0x39   : > { %1398 = sst [smem:[#allocation14_spill]] %s1420_s5  ;;  %s83_s30 = ssub.s32 %s1081_s17, %s1420_s5 }
  0x3a   : > { %p33_p9 = scmp.ge.s32.totalorder %s1422_s6, 2  ;;  %p804_p11 = scmp.lt.s32.totalorder %s1089_s19, 6 }
  0x3b   : > { %p1235_p13 = por %p46_p7, %p45_p3  ;;  %s137_s8 = sand.u32 1, %s1069_s14  }
  0x3c   : > { %s1424_s6 = smov (%p33_p9, %s1422_s6), 0  ;;  %s634_s12 = sshll.u32 %s137_s8, 5 }
  0x3d   : > { %1400 = sst [smem:[#allocation15_spill]] %s1424_s6  ;;  %s35_s20 = ssub.s32 %s1085_s18, %s1424_s6 }
  0x3e   : > { %p36_p0 = scmp.eq.s32.totalorder %s35_s20, 0  ;;  %s84_s21 = sor.u32 %s83_s30, %s35_s20 }
  0x3f   : > { %p85_p2 = scmp.eq.s32.totalorder %s84_s21, 0  ;;  %s653_s28 = sshll.u32 %s1085_s18, 9 }
  0x40   : > { %s1246_s3 = scalar_select %p36_p0, %s1069_s14, %s38_s7  }
  0x41   : > { %s1251_s4 = scalar_select %p85_p2, %s1057_s11, %s87_s23  }
  0x42   : > { %s1256_s17 = scalar_lea.hbm %s1376_s0, %s653_s28  ;;  %s141_s26 = scalar_lea.vmem [#allocation3], %s634_s12 }
  0x43   : > { %s148_s6 = sshll.u32 %s141_s26, 4  ;;  %p1264_p4 = pnand %p804_p11, %p1235_p13  ;;  %s1258_s6 = int_to_ptr.vmem [resolvable:$true] %s148_s6 }
  0x44   : > { %s1268_s23 = scalar_lea.sflag [#allocation4], %s137_s8  ;;  %s933_s1 = scalar_lea.hbm %s1256_s17, 512 }
  0x45   : > { %p934_p5 = scmp.ne.s32.totalorder %s1256_s17, %s933_s1  ;;  %p935_p6 = pneg %p1264_p4 }
  0x46   : > { %s938_s30 = scalar_lea.hbm %s1376_s0, 1024  ;;  %p939_p12 = scmp.lt.u32.totalorder %s1256_s17, %s1376_s0 }
  0x47   : > { %p936_p8 = pnand %p935_p6, %p934_p5  ;;  %p940_p1 = scmp.lt.u32.totalorder %s938_s30, %s933_s1 }
  0x48   : > { %p942_p7 = scmp.lt.u32.totalorder %s933_s1, %s1256_s17 }
  0x49   : > { %p937_p10 = pneg %p936_p8  ;;  %p941_p3 = por %p940_p1, %p939_p12 }
  0x4b   : > { %p943_p9 = por %p942_p7, %p941_p3 }
  0x4d   : > { %p944_p11 = pnand %p943_p9, %p937_p10 }
  0x4f   : > { %947 = shalt.err (!%p944_p11)
}
  0x50   : > { %s948_s8 = scalar_lea.vmem %s1258_s6, 512  ;;  %s1094_s20 = smov [#allocation3]  }
  0x51   : > { %p949_p13 = scmp.ne.s32.totalorder %s1258_s6, %s948_s8  ;;  %s953_s21 = sshll.u32 %s1094_s20, 4  ;;  %s954_s21 = int_to_ptr.vmem [resolvable:$false] %s953_s21 }
  0x52   : > { %s955_s28 = scalar_lea.vmem %s954_s21, 1024  ;;  %p956_p5 = scmp.lt.s32.totalorder %s1258_s6, %s954_s21 }
  0x53   : > { %p951_p0 = pnand %p949_p13, %p935_p6  ;;  %p957_p8 = scmp.lt.s32.totalorder %s955_s28, %s948_s8 }
  0x55   : > { %p952_p2 = pneg %p951_p0  ;;  %p958_p12 = por %p957_p8, %p956_p5 }
  0x57   : > { %p959_p1 = pnand %p958_p12, %p952_p2 }
  0x59   : > { %962 = shalt.err (!%p959_p1)
}
  0x5a   : > { %s1095_s1 = smov 128   ;;  %s1096_s26 = smov 8  }
  0x5b   : > { %798 = dma.hbm_to_vmem [thread:$0]  (!%p1264_p4), %s1256_s17, 512, %s1258_s6, %s1268_s23, %s1095_s1, %s1095_s1, %s1096_s26  }
  0x5c   : > { %p1402_p6 = scmp.ne.s32.totalorder %s1395_s27, 0 }
  0x5d   : > { %s162_s5 = sand.u32 (!%p1402_p6), 1, %s1065_s13   ;;  %p1403_p10 = scmp.ne.s32.totalorder (!%p1402_p6), %s1391_s24, 0 }
  0x5e   : > { %160 = sbr.rel (%p1402_p6) target bundleno = 485 (0x1e5), region = 28  ;;  %s638_s30 = sshll.u32 (!%p1402_p6), %s162_s5, 5 }
  0x5f   : > { %s163_s29 = scalar_lea.sflag (!%p1402_p6), [#allocation4], %s162_s5  ;;  %s166_s12 = scalar_lea.vmem (!%p1402_p6), [#allocation3], %s638_s30 }
  0x65   : > { %1036 = dma.done.wait (%p1403_p10), %s163_s29, 512  }
  0x66   : > { %1038 = vsyncadd (%p1403_p10), %s163_s29, 4294966784  ;;  %p1404_p3 = scmp.ne.s32.totalorder %s1390_s22, 0 }
  0x68   : > { %1040 = dma.done.wait (%p1404_p3), [#allocation7], 16384  }
  0x69   : > { %1042 = vsyncadd (%p1404_p3), [#allocation7], 4294950912  ;;  %s641_s17 = sshll.u32 %s1073_s15, 3  ;;  %vm194_vm0 = vcmask 523264   ;;  %s1097_s6 = smov 64   ;;  %v220_v4 = vld [vmem:[#allocation6 + $0x8] sm:$0xff] }
  0x6a   : > { %s192_s27 = scalar_lea.vmem %s166_s12, %s641_s17 [#allocation3]  ;;  %v224_v5 = vld [vmem:[#allocation6 + $0x28] sm:$0xff]  ;;  %v222_v7 = vld [vmem:[#allocation6 + $0x18] sm:$0xff]  ;;  %v219_v9 = vld [vmem:[#allocation6] sm:$0xff]  ;;  %vm203_vm1 = vcmask 1048064   ;;  %s188_s22 = sand.u32 1, %s1053_s10  }
  0x6b   : > { %v647_v0 = vld [vmem:[%s192_s27 + $0x3] sm:$0xff]  ;;  %v654_v6 = vpack.c.bf16 %v224_v5, %v220_v4  ;;  %v223_v11 = vld [vmem:[#allocation6 + $0x20] sm:$0xff]  ;;  %v228_v16 = vld [vmem:[#allocation6 + $0x48] sm:$0xff]  ;;  %s782_s24 = smul.u32 6, %s1077_s16  ;;  %s640_s7 = sshll.u32 %s188_s22, 4 }
  0x6c   : > { %v193_v1 = vld [vmem:[%s192_s27] sm:$0xff]  ;;  %213 = vrot.lane.b32.xlu0 %v647_v0, %s1097_s6  ;;  %v226_v8 = vld [vmem:[#allocation6 + $0x38] sm:$0xff]  ;;  %v656_v14 = vpack.c.bf16 %v223_v11, %v219_v9  ;;  %v232_v17 = vld [vmem:[#allocation6 + $0x68] sm:$0xff]  ;;  %s649_s23 = sshll.u32 %s1073_s15, 1  ;;  %s190_s21 = scalar_lea.vmem [#allocation8], %s640_s7 }
  0x6d   : > { %v645_v2 = vld [vmem:[%s192_s27 + $0x2] sm:$0xff]  ;;  %195 = vst.msk [vmem:[#allocation2] sm:$0xff] %vm194_vm0, %v193_v1  ;;  %v718_v10 = vpack.c.bf16 %v226_v8, %v222_v7  ;;  %655 = vmatprep.subr.bf16.mxu0 %v654_v6  ;;  %v658_v19 = vpack.c.bf16 %v232_v17, %v228_v16  ;;  %v227_v21 = vld [vmem:[#allocation6 + $0x40] sm:$0xff]  ;;  %v236_v27 = vld [vmem:[#allocation6 + $0x88] sm:$0xff]  ;;  %s520_s8 = sadd.s32 %s782_s24, %s649_s23  ;;  %s524_s28 = sshll.u32 %s190_s21, 4  ;;  %s1316_s28 = int_to_ptr.vmem [resolvable:$true] %s524_s28 }
  0x6e   : > { %v643_v3 = vld [vmem:[%s192_s27 + $0x1] sm:$0xff]  ;;  %208 = vst.msk [vmem:[#allocation2 + $0x8] sm:$0xff] %vm194_vm0, %v645_v2  ;;  %v231_v22 = vld [vmem:[#allocation6 + $0x60] sm:$0xff]  ;;  %657 = vmatpush1.bf16.msra.mxu0 %v656_v14  ;;  %v240_v29 = vld [vmem:[#allocation6 + $0xa8] sm:$0xff]  ;;  %s650_s20 = sshll.u32 %s520_s8, 7  ;;  %s508_s15 = scalar_lea.sflag [#allocation5], %s188_s22 }
  0x6f   : > { %v221_v12 = vld [vmem:[#allocation6 + $0x10] sm:$0xff]  ;;  %v230_v18 = vld [vmem:[#allocation6 + $0x58] sm:$0xff]  ;;  %719 = vmatprep.subr.bf16.mxu1 %v718_v10  ;;  %v660_v24 = vpack.c.bf16 %v231_v22, %v227_v21  ;;  %659 = vmatprep.subr.bf16.mxu0 %v658_v19  ;;  %v662_v32 = vpack.c.bf16 %v240_v29, %v236_v27  ;;  %v235_v34 = vld [vmem:[#allocation6 + $0x80] sm:$0xff]  ;;  %s1314_s5 = scalar_lea.hbm %s1378_s2, %s650_s20  ;;  %s963_s16 = scalar_lea.vmem %s1316_s28, 256 }
  0x70   : > { %v225_v13 = vld [vmem:[#allocation6 + $0x30] sm:$0xff]  ;;  %200 = vrot.lane.b32.xlu0 %v643_v3, %s1097_s6  ;;  %v234_v20 = vld [vmem:[#allocation6 + $0x78] sm:$0xff]  ;;  %v239_v35 = vld [vmem:[#allocation6 + $0xa0] sm:$0xff]  ;;  %p964_p4 = scmp.ne.s32.totalorder %s1316_s28, %s963_s16  ;;  %p1405_p7 = scmp.ne.s32.totalorder %s1392_s25, 0 }
  0x71   : > { %v720_v15 = vpack.c.bf16 %v225_v13, %v221_v12  ;;  %v722_v23 = vpack.c.bf16 %v234_v20, %v230_v18  ;;  %v229_v25 = vld [vmem:[#allocation6 + $0x50] sm:$0xff]  ;;  %v238_v30 = vld [vmem:[#allocation6 + $0x98] sm:$0xff]  ;;  %v244_v38 = vld [vmem:[#allocation6 + $0xc8] sm:$0xff]  ;;  %v664_v40 = vpack.c.bf16 %v239_v35, %v235_v34  ;;  %s1098_s30 = smov [#allocation8]  }
  0x72   : > { %v233_v26 = vld [vmem:[#allocation6 + $0x70] sm:$0xff]  ;;  %v242_v31 = vld [vmem:[#allocation6 + $0xb8] sm:$0xff]  ;;  %v248_v39 = vld [vmem:[#allocation6 + $0xe8] sm:$0xff]  ;;  %661 = vmatpush1.bf16.msra.mxu0 %v660_v24  ;;  %p965_p9 = pnand %p964_p4, %p1405_p7  ;;  %s967_s29 = sshll.u32 %s1098_s30, 4  ;;  %s968_s29 = int_to_ptr.vmem [resolvable:$false] %s967_s29 }
  0x73   : > { %721 = vmatpush1.bf16.msra.mxu1 %v720_v15  ;;  %v724_v28 = vpack.c.bf16 %v233_v26, %v229_v25  ;;  %v726_v33 = vpack.c.bf16 %v242_v31, %v238_v30  ;;  %v237_v36 = vld [vmem:[#allocation6 + $0x90] sm:$0xff]  ;;  %v246_v42 = vld [vmem:[#allocation6 + $0xd8] sm:$0xff]  ;;  %v243_v44 = vld [vmem:[#allocation6 + $0xc0] sm:$0xff]  ;;  %663 = vmatprep.subr.bf16.mxu0 %v662_v32  ;;  %v666_v45 = vpack.c.bf16 %v248_v39, %v244_v38  ;;  %s969_s12 = scalar_lea.vmem %s968_s29, 512  ;;  %p970_p13 = scmp.lt.s32.totalorder %s1316_s28, %s968_s29 }
  0x74   : > { %723 = vmatprep.subr.bf16.mxu1 %v722_v23  ;;  %v241_v37 = vld [vmem:[#allocation6 + $0xb0] sm:$0xff]  ;;  %v250_v43 = vld [vmem:[#allocation6 + $0xf8] sm:$0xff]  ;;  %v247_v47 = vld [vmem:[#allocation6 + $0xe0] sm:$0xff]  ;;  %p966_p11 = pneg %p965_p9  ;;  %p971_p0 = scmp.lt.s32.totalorder %s969_s12, %s963_s16 }
  0x75   : > { %v728_v41 = vpack.c.bf16 %v241_v37, %v237_v36  ;;  %v730_v46 = vpack.c.bf16 %v250_v43, %v246_v42  ;;  %v245_v48 = vld [vmem:[#allocation6 + $0xd0] sm:$0xff]  ;;  %v252_v50 = vld [vmem:[#allocation6 + $0x108] sm:$0xff]  ;;  %v254_v52 = vld [vmem:[#allocation6 + $0x118] sm:$0xff]  ;;  %v668_v54 = vpack.c.bf16 %v247_v47, %v243_v44 }
  0x76   : > { %v249_v49 = vld [vmem:[#allocation6 + $0xf0] sm:$0xff]  ;;  %v256_v51 = vld [vmem:[#allocation6 + $0x128] sm:$0xff]  ;;  %v258_v53 = vld [vmem:[#allocation6 + $0x138] sm:$0xff]  ;;  %665 = vmatpush1.bf16.msra.mxu0 %v664_v40  ;;  %p972_p2 = por %p971_p0, %p970_p13 }
  0x77   : > { %725 = vmatpush1.bf16.msra.mxu1 %v724_v28  ;;  %v732_v55 = vpack.c.bf16 %v249_v49, %v245_v48  ;;  %v251_v56 = vld [vmem:[#allocation6 + $0x100] sm:$0xff]  ;;  %667 = vmatprep.subr.bf16.mxu0 %v666_v45  ;;  %v670_v58 = vpack.c.bf16 %v256_v51, %v252_v50  ;;  %v734_v59 = vpack.c.bf16 %v258_v53, %v254_v52  ;;  %v253_v60 = vld [vmem:[#allocation6 + $0x110] sm:$0xff]  ;;  %v260_v62 = vld [vmem:[#allocation6 + $0x148] sm:$0xff] }
  0x78   : > { %727 = vmatprep.subr.bf16.mxu1 %v726_v33  ;;  %v255_v57 = vld [vmem:[#allocation6 + $0x120] sm:$0xff]  ;;  %v257_v61 = vld [vmem:[#allocation6 + $0x130] sm:$0xff]  ;;  %v264_v63 = vld [vmem:[#allocation6 + $0x168] sm:$0xff]  ;;  %p973_p5 = pnand %p972_p2, %p966_p11 }
  0x79   : > { %v262_v0 = vld [vmem:[#allocation6 + $0x158] sm:$0xff]  ;;  %v672_v2 = vpack.c.bf16 %v255_v57, %v251_v56  ;;  %v736_v3 = vpack.c.bf16 %v257_v61, %v253_v60  ;;  %v259_v4 = vld [vmem:[#allocation6 + $0x140] sm:$0xff]  ;;  %v674_v6 = vpack.c.bf16 %v264_v63, %v260_v62  ;;  %v261_v8 = vld [vmem:[#allocation6 + $0x150] sm:$0xff] }
  0x7a   : > { %v266_v1 = vld [vmem:[#allocation6 + $0x178] sm:$0xff]  ;;  %669 = vmatpush1.bf16.msra.mxu0 %v668_v54  ;;  %v263_v5 = vld [vmem:[#allocation6 + $0x160] sm:$0xff]  ;;  %v265_v9 = vld [vmem:[#allocation6 + $0x170] sm:$0xff] }
  0x7b   : > { %729 = vmatpush1.bf16.msra.mxu1 %v728_v41  ;;  %671 = vmatprep.subr.bf16.mxu0 %v670_v58  ;;  %v738_v7 = vpack.c.bf16 %v266_v1, %v262_v0  ;;  %v268_v10 = vld [vmem:[#allocation6 + $0x188] sm:$0xff]  ;;  %v270_v12 = vld [vmem:[#allocation6 + $0x198] sm:$0xff]  ;;  %v676_v14 = vpack.c.bf16 %v263_v5, %v259_v4  ;;  %v740_v15 = vpack.c.bf16 %v265_v9, %v261_v8  ;;  %v267_v16 = vld [vmem:[#allocation6 + $0x180] sm:$0xff] }
  0x7c   : > { %731 = vmatprep.subr.bf16.mxu1 %v730_v46  ;;  %v272_v11 = vld [vmem:[#allocation6 + $0x1a8] sm:$0xff]  ;;  %v274_v13 = vld [vmem:[#allocation6 + $0x1b8] sm:$0xff]  ;;  %v271_v17 = vld [vmem:[#allocation6 + $0x1a0] sm:$0xff] }
  0x7d   : > { %v678_v18 = vpack.c.bf16 %v272_v11, %v268_v10  ;;  %v742_v19 = vpack.c.bf16 %v274_v13, %v270_v12  ;;  %v269_v20 = vld [vmem:[#allocation6 + $0x190] sm:$0xff]  ;;  %v276_v22 = vld [vmem:[#allocation6 + $0x1c8] sm:$0xff]  ;;  %v278_v24 = vld [vmem:[#allocation6 + $0x1d8] sm:$0xff]  ;;  %v680_v26 = vpack.c.bf16 %v271_v17, %v267_v16 }
  0x7e   : > { %673 = vmatpush1.bf16.msra.mxu0 %v672_v2  ;;  %v273_v21 = vld [vmem:[#allocation6 + $0x1b0] sm:$0xff]  ;;  %v280_v23 = vld [vmem:[#allocation6 + $0x1e8] sm:$0xff]  ;;  %v282_v25 = vld [vmem:[#allocation6 + $0x1f8] sm:$0xff] }
  0x7f   : > { %733 = vmatpush1.bf16.msra.mxu1 %v732_v55  ;;  %675 = vmatprep.subr.bf16.mxu0 %v674_v6  ;;  %v744_v27 = vpack.c.bf16 %v273_v21, %v269_v20  ;;  %v275_v28 = vld [vmem:[#allocation6 + $0x1c0] sm:$0xff]  ;;  %v682_v30 = vpack.c.bf16 %v280_v23, %v276_v22  ;;  %v746_v31 = vpack.c.bf16 %v282_v25, %v278_v24  ;;  %v277_v32 = vld [vmem:[#allocation6 + $0x1d0] sm:$0xff]  ;;  %v284_v34 = vld [vmem:[#allocation6 + $0x208] sm:$0xff] }
  0x80   : > { %735 = vmatprep.subr.bf16.mxu1 %v734_v59  ;;  %v279_v29 = vld [vmem:[#allocation6 + $0x1e0] sm:$0xff]  ;;  %v281_v33 = vld [vmem:[#allocation6 + $0x1f0] sm:$0xff]  ;;  %v288_v35 = vld [vmem:[#allocation6 + $0x228] sm:$0xff] }
  0x81   : > { %v286_v36 = vld [vmem:[#allocation6 + $0x218] sm:$0xff]  ;;  %v684_v38 = vpack.c.bf16 %v279_v29, %v275_v28  ;;  %v748_v39 = vpack.c.bf16 %v281_v33, %v277_v32  ;;  %v283_v40 = vld [vmem:[#allocation6 + $0x200] sm:$0xff]  ;;  %v686_v42 = vpack.c.bf16 %v288_v35, %v284_v34  ;;  %v285_v44 = vld [vmem:[#allocation6 + $0x210] sm:$0xff] }
  0x82   : > { %677 = vmatpush1.bf16.msra.mxu0 %v676_v14  ;;  %v290_v37 = vld [vmem:[#allocation6 + $0x238] sm:$0xff]  ;;  %v287_v41 = vld [vmem:[#allocation6 + $0x220] sm:$0xff]  ;;  %v289_v45 = vld [vmem:[#allocation6 + $0x230] sm:$0xff] }
  0x83   : > { %737 = vmatpush1.bf16.msra.mxu1 %v736_v3  ;;  %679 = vmatprep.subr.bf16.mxu0 %v678_v18  ;;  %v750_v43 = vpack.c.bf16 %v290_v37, %v286_v36  ;;  %v292_v46 = vld [vmem:[#allocation6 + $0x248] sm:$0xff]  ;;  %v294_v48 = vld [vmem:[#allocation6 + $0x258] sm:$0xff]  ;;  %v688_v50 = vpack.c.bf16 %v287_v41, %v283_v40  ;;  %v752_v51 = vpack.c.bf16 %v289_v45, %v285_v44  ;;  %v291_v52 = vld [vmem:[#allocation6 + $0x240] sm:$0xff] }
  0x84   : > { %739 = vmatprep.subr.bf16.mxu1 %v738_v7  ;;  %v296_v47 = vld [vmem:[#allocation6 + $0x268] sm:$0xff]  ;;  %v298_v49 = vld [vmem:[#allocation6 + $0x278] sm:$0xff]  ;;  %v295_v53 = vld [vmem:[#allocation6 + $0x260] sm:$0xff] }
  0x85   : > { %v690_v54 = vpack.c.bf16 %v296_v47, %v292_v46  ;;  %v754_v55 = vpack.c.bf16 %v298_v49, %v294_v48  ;;  %v293_v56 = vld [vmem:[#allocation6 + $0x250] sm:$0xff]  ;;  %v300_v58 = vld [vmem:[#allocation6 + $0x288] sm:$0xff]  ;;  %v302_v60 = vld [vmem:[#allocation6 + $0x298] sm:$0xff]  ;;  %v692_v62 = vpack.c.bf16 %v295_v53, %v291_v52 }
  0x86   : > { %681 = vmatpush1.bf16.msra.mxu0 %v680_v26  ;;  %v297_v57 = vld [vmem:[#allocation6 + $0x270] sm:$0xff]  ;;  %v304_v59 = vld [vmem:[#allocation6 + $0x2a8] sm:$0xff]  ;;  %v306_v61 = vld [vmem:[#allocation6 + $0x2b8] sm:$0xff] }
  0x87   : > { %741 = vmatpush1.bf16.msra.mxu1 %v740_v15  ;;  %683 = vmatprep.subr.bf16.mxu0 %v682_v30  ;;  %v756_v63 = vpack.c.bf16 %v297_v57, %v293_v56  ;;  %v299_v0 = vld [vmem:[#allocation6 + $0x280] sm:$0xff]  ;;  %v694_v2 = vpack.c.bf16 %v304_v59, %v300_v58  ;;  %v758_v3 = vpack.c.bf16 %v306_v61, %v302_v60  ;;  %v301_v4 = vld [vmem:[#allocation6 + $0x290] sm:$0xff]  ;;  %v308_v6 = vld [vmem:[#allocation6 + $0x2c8] sm:$0xff] }
  0x88   : > { %743 = vmatprep.subr.bf16.mxu1 %v742_v19  ;;  %v303_v1 = vld [vmem:[#allocation6 + $0x2a0] sm:$0xff]  ;;  %v305_v5 = vld [vmem:[#allocation6 + $0x2b0] sm:$0xff]  ;;  %v312_v7 = vld [vmem:[#allocation6 + $0x2e8] sm:$0xff] }
  0x89   : > { %v310_v8 = vld [vmem:[#allocation6 + $0x2d8] sm:$0xff]  ;;  %v696_v10 = vpack.c.bf16 %v303_v1, %v299_v0  ;;  %v760_v11 = vpack.c.bf16 %v305_v5, %v301_v4  ;;  %v307_v12 = vld [vmem:[#allocation6 + $0x2c0] sm:$0xff]  ;;  %v698_v14 = vpack.c.bf16 %v312_v7, %v308_v6  ;;  %v309_v16 = vld [vmem:[#allocation6 + $0x2d0] sm:$0xff] }
  0x8a   : > { %685 = vmatpush1.bf16.msra.mxu0 %v684_v38  ;;  %v314_v9 = vld [vmem:[#allocation6 + $0x2f8] sm:$0xff]  ;;  %v311_v13 = vld [vmem:[#allocation6 + $0x2e0] sm:$0xff]  ;;  %v313_v17 = vld [vmem:[#allocation6 + $0x2f0] sm:$0xff] }
  0x8b   : > { %745 = vmatpush1.bf16.msra.mxu1 %v744_v27  ;;  %687 = vmatprep.subr.bf16.mxu0 %v686_v42  ;;  %v762_v15 = vpack.c.bf16 %v314_v9, %v310_v8  ;;  %v316_v18 = vld [vmem:[#allocation6 + $0x308] sm:$0xff]  ;;  %v318_v20 = vld [vmem:[#allocation6 + $0x318] sm:$0xff]  ;;  %v700_v22 = vpack.c.bf16 %v311_v13, %v307_v12  ;;  %v764_v23 = vpack.c.bf16 %v313_v17, %v309_v16  ;;  %v315_v24 = vld [vmem:[#allocation6 + $0x300] sm:$0xff] }
  0x8c   : > { %747 = vmatprep.subr.bf16.mxu1 %v746_v31  ;;  %v320_v19 = vld [vmem:[#allocation6 + $0x328] sm:$0xff]  ;;  %v322_v21 = vld [vmem:[#allocation6 + $0x338] sm:$0xff]  ;;  %v319_v25 = vld [vmem:[#allocation6 + $0x320] sm:$0xff] }
  0x8d   : > { %v702_v26 = vpack.c.bf16 %v320_v19, %v316_v18  ;;  %v766_v27 = vpack.c.bf16 %v322_v21, %v318_v20  ;;  %v317_v28 = vld [vmem:[#allocation6 + $0x310] sm:$0xff]  ;;  %v324_v30 = vld [vmem:[#allocation6 + $0x348] sm:$0xff]  ;;  %v326_v32 = vld [vmem:[#allocation6 + $0x358] sm:$0xff]  ;;  %v704_v34 = vpack.c.bf16 %v319_v25, %v315_v24 }
  0x8e   : > { %689 = vmatpush1.bf16.msra.mxu0 %v688_v50  ;;  %v321_v29 = vld [vmem:[#allocation6 + $0x330] sm:$0xff]  ;;  %v328_v31 = vld [vmem:[#allocation6 + $0x368] sm:$0xff]  ;;  %v330_v33 = vld [vmem:[#allocation6 + $0x378] sm:$0xff] }
  0x8f   : > { %749 = vmatpush1.bf16.msra.mxu1 %v748_v39  ;;  %691 = vmatprep.subr.bf16.mxu0 %v690_v54  ;;  %v768_v35 = vpack.c.bf16 %v321_v29, %v317_v28  ;;  %v323_v36 = vld [vmem:[#allocation6 + $0x340] sm:$0xff]  ;;  %v706_v38 = vpack.c.bf16 %v328_v31, %v324_v30  ;;  %v770_v39 = vpack.c.bf16 %v330_v33, %v326_v32  ;;  %v325_v40 = vld [vmem:[#allocation6 + $0x350] sm:$0xff]  ;;  %v332_v42 = vld [vmem:[#allocation6 + $0x388] sm:$0xff] }
  0x90   : > { %751 = vmatprep.subr.bf16.mxu1 %v750_v43  ;;  %v327_v37 = vld [vmem:[#allocation6 + $0x360] sm:$0xff]  ;;  %v329_v41 = vld [vmem:[#allocation6 + $0x370] sm:$0xff]  ;;  %v336_v43 = vld [vmem:[#allocation6 + $0x3a8] sm:$0xff] }
  0x91   : > { %v334_v44 = vld [vmem:[#allocation6 + $0x398] sm:$0xff]  ;;  %v708_v46 = vpack.c.bf16 %v327_v37, %v323_v36  ;;  %v772_v47 = vpack.c.bf16 %v329_v41, %v325_v40  ;;  %v331_v48 = vld [vmem:[#allocation6 + $0x380] sm:$0xff]  ;;  %v710_v50 = vpack.c.bf16 %v336_v43, %v332_v42  ;;  %v333_v52 = vld [vmem:[#allocation6 + $0x390] sm:$0xff] }
  0x92   : > { %693 = vmatpush1.bf16.msra.mxu0 %v692_v62  ;;  %v338_v45 = vld [vmem:[#allocation6 + $0x3b8] sm:$0xff]  ;;  %v335_v49 = vld [vmem:[#allocation6 + $0x3a0] sm:$0xff]  ;;  %v337_v53 = vld [vmem:[#allocation6 + $0x3b0] sm:$0xff] }
  0x93   : > { %753 = vmatpush1.bf16.msra.mxu1 %v752_v51  ;;  %695 = vmatprep.subr.bf16.mxu0 %v694_v2  ;;  %v774_v51 = vpack.c.bf16 %v338_v45, %v334_v44  ;;  %v340_v54 = vld [vmem:[#allocation6 + $0x3c8] sm:$0xff]  ;;  %v342_v56 = vld [vmem:[#allocation6 + $0x3d8] sm:$0xff]  ;;  %v712_v58 = vpack.c.bf16 %v335_v49, %v331_v48  ;;  %v776_v59 = vpack.c.bf16 %v337_v53, %v333_v52  ;;  %v339_v60 = vld [vmem:[#allocation6 + $0x3c0] sm:$0xff] }
  0x94   : > { %755 = vmatprep.subr.bf16.mxu1 %v754_v55  ;;  %v344_v55 = vld [vmem:[#allocation6 + $0x3e8] sm:$0xff]  ;;  %v346_v57 = vld [vmem:[#allocation6 + $0x3f8] sm:$0xff]  ;;  %v341_v0 = vld [vmem:[#allocation6 + $0x3d0] sm:$0xff] }
  0x95   : > { %v714_v61 = vpack.c.bf16 %v344_v55, %v340_v54  ;;  %v778_v62 = vpack.c.bf16 %v346_v57, %v342_v56  ;;  %v345_v1 = vld [vmem:[#allocation6 + $0x3f0] sm:$0xff] }
  0x96   : > { %697 = vmatpush1.bf16.msra.mxu0 %v696_v10 }
  0x97   : > { %757 = vmatpush1.bf16.msra.mxu1 %v756_v63  ;;  %699 = vmatprep.subr.bf16.mxu0 %v698_v14  ;;  %v343_v63 = vld [vmem:[#allocation6 + $0x3e0] sm:$0xff] }
  0x98   : > { %759 = vmatprep.subr.bf16.mxu1 %v758_v3  ;;  %v716_v2 = vpack.c.bf16 %v343_v63, %v339_v60  ;;  %v780_v3 = vpack.c.bf16 %v345_v1, %v341_v0 }
  0x9a   : > { %701 = vmatpush1.bf16.msra.mxu0 %v700_v22 }
  0x9b   : > { %761 = vmatpush1.bf16.msra.mxu1 %v760_v11  ;;  %703 = vmatprep.subr.bf16.mxu0 %v702_v26 }
  0x9c   : > { %763 = vmatprep.subr.bf16.mxu1 %v762_v15 }
  0x9e   : > { %705 = vmatpush1.bf16.msra.mxu0 %v704_v34 }
  0x9f   : > { %765 = vmatpush1.bf16.msra.mxu1 %v764_v23  ;;  %707 = vmatprep.subr.bf16.mxu0 %v706_v38 }
  0xa0   : > { %767 = vmatprep.subr.bf16.mxu1 %v766_v27 }
  0xa2   : > { %709 = vmatpush1.bf16.msra.mxu0 %v708_v46 }
  0xa3   : > { %769 = vmatpush1.bf16.msra.mxu1 %v768_v35  ;;  %711 = vmatprep.subr.bf16.mxu0 %v710_v50 }
  0xa4   : > { %771 = vmatprep.subr.bf16.mxu1 %v770_v39 }
  0xa6   : > { %713 = vmatpush1.bf16.msra.mxu0 %v712_v58 }
  0xa7   : > { %773 = vmatpush1.bf16.msra.mxu1 %v772_v47  ;;  %715 = vmatprep.subr.bf16.mxu0 %v714_v61 }
  0xa8   : > { %775 = vmatprep.subr.bf16.mxu1 %v774_v51 }
  0xaa   : > { %717 = vmatpush1.bf16.msra.mxu0 %v716_v2 }
  0xab   : > { %777 = vmatpush1.bf16.msra.mxu1 %v776_v59 }
  0xac   : > { %779 = vmatprep.subr.bf16.mxu1 %v778_v62 }
  0xaf   : > { %781 = vmatpush1.bf16.msra.mxu1 %v780_v3 }
  0xde   : > { %v214_v4 = vpop.permute.xlu0 %213 }
  0xdf   : > { %216 = vst.msk [vmem:[#allocation2 + $0x8] sm:$0xff] %vm203_vm1, %v214_v4 }
  0xe2   : > { %v201_v5 = vpop.permute.xlu0 %200 }
  0xe3   : > { %204 = vst.msk [vmem:[#allocation2] sm:$0xff] %vm203_vm1, %v201_v5 }
  0xe6   : > { %v218_v6 = vld [vmem:[#allocation2 + $0x8] sm:$0xff] }
  0xe7   : > { %411 = vmatprep.mubr.f32.mxu0 %v218_v6  ;;  %482 = vmatprep.mubr.f32.mxu1 %v218_v6 }
  0xea   : > { %v217_v7 = vld [vmem:[#allocation2] sm:$0xff] }
  0xeb   : > { %412 = vmatmul.mubr.f32.vlgmr.msra.gmra.mrb[0].mxu0 %v217_v7  ;;  %483 = vmatmul.mubr.f32.vlgmr.msra.gmra.mrb[0].mxu1 %v217_v7 }
 0x1be   : > { %v413_v8 = vpop.f32.mrb[0].mxu0  ;;  %v484_v9 = vpop.f32.mrb[0].mxu1 }
 0x1bf   : > { %v489_v10 = vmul.f32 %v413_v8, %v413_v8  ;;  %v491_v11 = vmul.f32 %v484_v9, %v484_v9  ;;  %v415_v12 = vpop.f32.mrb[1].mxu0  ;;  %v486_v13 = vpop.f32.mrb[1].mxu1 }
 0x1c0   : > { %v490_v14 = vmul.f32 %v415_v12, %v415_v12  ;;  %v492_v15 = vmul.f32 %v486_v13, %v486_v13 }
 0x1c1   : > { %v493_v16 = vadd.f32 %v491_v11, %v489_v10 }
 0x1c2   : > { %v494_v17 = vadd.f32 %v492_v15, %v490_v14 }
 0x1c3   : > { %v495_v18 = vadd.f32 1e-20, %v493_v16 }
 0x1c4   : > { %v496_v19 = vadd.f32 1e-20, %v494_v17 }
 0x1c5   : > { %v497_v20 = vadd.f32 1e-20, %v495_v18 }
 0x1c6   : > { %v498_v21 = vadd.f32 1e-20, %v496_v19 }
 0x1c7   : > { %901 = vlog2.f32 %v497_v20 }
 0x1c8   : > { %903 = vlog2.f32 %v498_v21 }
 0x1d1   : > { %v902_v22 = vpop.eup %901 }
 0x1d2   : > { %v904_v23 = vpop.eup %903  ;;  %v500_v24 = vmul.f32 0.6931472, %v902_v22 }
 0x1d3   : > { %v502_v25 = vmul.f32 0.6931472, %v904_v23 }
 0x1d4   : > { %v503_v26 = vmul.f32 4.3429446, %v500_v24 }
 0x1d5   : > { %v504_v27 = vmul.f32 4.3429446, %v502_v25 }
 0x1d6   : > { %505 = vst [vmem:[%s190_s21] sm:$0xff] %v503_v26 }
 0x1d7   : > { %506 = vst [vmem:[%s190_s21 + $0x8] sm:$0xff] %v504_v27 }
 0x1d8   : > { %976 = shalt.err (!%p973_p5)
}
 0x1d9   : > { %s977_s17 = scalar_lea.hbm %s1314_s5, 256  ;;  %s981_s22 = scalar_lea.hbm %s1378_s2, 1536 }
 0x1da   : > { %p978_p8 = scmp.ne.s32.totalorder %s1314_s5, %s977_s17  ;;  %p982_p6 = scmp.lt.u32.totalorder %s1314_s5, %s1378_s2 }
 0x1db   : > { %p983_p10 = scmp.lt.u32.totalorder %s981_s22, %s977_s17  ;;  %p985_p4 = scmp.lt.u32.totalorder %s977_s17, %s1314_s5 }
 0x1dc   : > { %p979_p12 = pnand %p978_p8, %p1405_p7 }
 0x1dd   : > { %p984_p3 = por %p983_p10, %p982_p6 }
 0x1de   : > { %p980_p1 = pneg %p979_p12 }
 0x1df   : > { %p986_p9 = por %p985_p4, %p984_p3 }
 0x1e1   : > { %p987_p11 = pnand %p986_p9, %p980_p1 }
 0x1e3   : > { %990 = shalt.err (!%p987_p11)
}
 0x1e4   : > { %789 = dma.vmem_to_hbm [thread:$0]  (%p1405_p7), %s1316_s28, 256, %s1314_s5, %s508_s15  }
 0x1e5 PF: > { %s1406_s23 = sld [smem:[#allocation13_spill]]  ;;  %p806_p13 = scmp.ge.s32.totalorder %s1089_s19, 2 }
 0x1e6   : > { %s536_s8 = sand.u32 1, %s1049_s9  }
 0x1e7   : > { %s537_s20 = scalar_lea.sflag [#allocation5], %s536_s8 }
 0x1eb   : > { %p1407_p0 = scmp.ne.s32.totalorder %s1406_s23, 0 }
 0x1ed   : > { %p800_p2 = pnand %p806_p13, %p1407_p0 }
 0x1ef   : > { %1044 = dma.done.wait (!%p800_p2), %s537_s20, 256  }
 0x1f0   : > { %1046 = vsyncadd (!%p800_p2), %s537_s20, 4294967040  ;;  %s19_s19 = sadd.s32 1, %s1089_s19   ;;  %s1408_s15 = sld [smem:[#allocation12_spill]] }
 0x1f1   : > { %p16_p5 = scmp.ge.s32.totalorder %s19_s19, 8   ;;  %s1409_s17 = sld [smem:[#allocation14_spill]] }
 0x1f2   : > { %s1410_s25 = sld [smem:[#allocation15_spill]]  ;;  %s1411_s9 = smov %s1053_s10 }
 0x1f3   : > { %s1412_s10 = smov %s1057_s11  ;;  %s1413_s11 = smov %s1251_s4 }
 0x1f4   : > { %s1414_s12 = smov %s1065_s13  ;;  %s1415_s13 = smov %s1069_s14 }
 0x1f5   : > { %s1416_s14 = smov %s1246_s3  ;;  %s1417_s16 = smov %s1085_s18 }
 0x1f6   :  { %18 = sbr.rel (!%p16_p5) target bundleno = 12 (0xc), region = 81 }
 0x1f8   : > { %s1418_s18 = smov %s1410_s25 }
 0x1fd   :  { %542 = vsyncpa [#allocation4], 1 }
 0x1fe   :  { %544 = vsyncpa [#allocation4 + $0x1], 1 }
 0x1ff   :  { %545 = vsyncpa [#allocation7], 1 }
 0x200   :  { %546 = vsyncpa [#allocation5], 1 }
 0x201   :  { %548 = vsyncpa [#allocation5 + $0x1], 1 }

</bundles_post_ra>
